<compile_context>
chip_gen: v5e
topology: v5e:2x2
jax: 0.10.0
libtpu: 0.0.40
codegen_flags: <defaults>
</compile_context>

<pallas_src>
import functools

import jax
import jax.numpy as jnp
from jax import lax
from jax.experimental import pallas as pl
from jax.experimental.pallas import tpu as pltpu


def _lsce_kernel(n_total, needs_mask, logits_ref, tgt_ref, out_ref):
    x = logits_ref[...].astype(jnp.float32)            # (T, C) upcast in-kernel
    t, c = x.shape

    if needs_mask:
        # Mask rows that fall beyond N (padding of the last row tile).
        i = pl.program_id(0)
        row = lax.broadcasted_iota(jnp.int32, (t, 1), 0) + i * t
        valid = row < n_total                           # (T, 1) bool
        x = jnp.where(valid, x, 0.0)                    # keep padded rows finite
        validf = valid.astype(jnp.float32)
    else:
        validf = None

    # Stable logsumexp along the class (lane) axis.
    m = jnp.max(x, axis=-1, keepdims=True)              # (T, 1)
    lse = m + jnp.log(jnp.sum(jnp.exp(x - m), axis=-1, keepdims=True))  # (T, 1)

    # sum over classes of log_preds, without materializing log_preds:
    #   sum_c(x - lse) = sum_c(x) - C * lse
    sum_x = jnp.sum(x, axis=-1, keepdims=True)          # (T, 1)
    row_sum_lp = sum_x - c * lse                        # (T, 1)

    # Gather x[i, target[i]] via iota-compare + select, then subtract lse.
    col = lax.broadcasted_iota(jnp.int32, (t, c), 1)
    tgt = tgt_ref[...]                                  # (T, 1) int32, broadcasts
    picked_x = jnp.sum(jnp.where(col == tgt, x, 0.0), axis=-1, keepdims=True)
    picked_lp = picked_x - lse                          # (T, 1)

    if needs_mask:
        row_sum_lp = row_sum_lp * validf
        picked_lp = picked_lp * validf

    smooth_sum = -jnp.sum(row_sum_lp)                   # scalar partial sum
    nll_sum = -jnp.sum(picked_lp)                       # scalar partial sum

    # Lane-dense (1, 128) store: lane 0 = smooth partial, lane 1 = nll partial.
    lane = lax.broadcasted_iota(jnp.int32, (1, 128), 1)
    out_ref[...] = jnp.where(lane == 0, smooth_sum,
                             jnp.where(lane == 1, nll_sum, 0.0))


def label_smoothing_cross_entropy(output, target, eps=0.1, reduction="mean",
                                  row_tile=None):
    """output: (N, C) float logits (any float dtype); target: (N,) int classes."""
    n, c = output.shape
    dtype_bytes = jnp.dtype(output.dtype).itemsize

    if row_tile is None:
        # Size the row tile so double-buffered input tiles stay well under the
        # scoped VMEM default on every generation (incl. v7x's smaller VMEM).
        budget = 8 * 1024 * 1024
        rt = budget // max(1, 2 * c * dtype_bytes)
        rt = max(16, min(int(rt), 1024))
        row_tile = (rt // 16) * 16                      # multiple of 16 (bf16-safe)
        # TODO(synk): for very large C (LLM-scale vocab) add class-axis tiling
        # instead of relying on a 16-row minimum tile.
    if n <= row_tile:
        row_tile = n                                    # full-dim block is always legal
    num_blocks = pl.cdiv(n, row_tile)
    needs_mask = (n % row_tile) != 0

    tgt2d = target.astype(jnp.int32).reshape(n, 1)

    partial = pl.pallas_call(
        functools.partial(_lsce_kernel, n, needs_mask),
        out_shape=jax.ShapeDtypeStruct((num_blocks, 128), jnp.float32),
        grid=(num_blocks,),
        in_specs=[
            pl.BlockSpec((row_tile, c), lambda i: (i, 0)),
            pl.BlockSpec((row_tile, 1), lambda i: (i, 0)),
        ],
        out_specs=pl.BlockSpec((1, 128), lambda i: (i, 0)),
        compiler_params=pltpu.CompilerParams(
            dimension_semantics=("parallel",)),
    )(output, tgt2d)                                    # native dtype, no wrapper cast

    smooth_sum = jnp.sum(partial[:, 0])
    nll_sum = jnp.sum(partial[:, 1])

    if reduction == "mean":
        smooth = smooth_sum / n
        nll = nll_sum / n
    elif reduction == "sum":
        smooth = smooth_sum
        nll = nll_sum
    else:
        # TODO(synk): reduction='none' needs a per-row output spec; not implemented.
        raise NotImplementedError("only reduction in {'mean', 'sum'} is supported")

    return smooth * eps / c + (1.0 - eps) * nll


def _reference(output, target, eps=0.1):
    log_preds = jax.nn.log_softmax(output.astype(jnp.float32), axis=-1)
    c = output.shape[-1]
    smooth = (-log_preds.sum(axis=-1)).mean()
    nll = -jnp.take_along_axis(log_preds, target[:, None], axis=-1).mean()
    return smooth * eps / c + (1.0 - eps) * nll


if __name__ == "__main__":
    key = jax.random.PRNGKey(0)
    k1, k2, k3, k4 = jax.random.split(key, 4)

    # Small shapes consistent with the module: batch=8, classes=32.
    N, C = 8, 32
    logits = jax.random.normal(k1, (N, C), dtype=jnp.float32)
    target = jax.random.randint(k2, (N,), 0, C, dtype=jnp.int32)

    loss = label_smoothing_cross_entropy(logits, target, eps=0.1)
    loss = jax.block_until_ready(loss)
    ref = _reference(logits, target, eps=0.1)
    assert jnp.allclose(loss, ref, atol=1e-5, rtol=1e-5), (loss, ref)

    # Second check: exercise the row grid + padded-row masking (N not a
    # multiple of the tile) and the native-bf16 ingestion path.
    N2, C2 = 40, 128
    logits2 = jax.random.normal(k3, (N2, C2), dtype=jnp.bfloat16)
    target2 = jax.random.randint(k4, (N2,), 0, C2, dtype=jnp.int32)
    loss2 = label_smoothing_cross_entropy(logits2, target2, eps=0.1, row_tile=16)
    loss2 = jax.block_until_ready(loss2)
    ref2 = _reference(logits2, target2, eps=0.1)
    assert jnp.allclose(loss2, ref2, atol=2e-2, rtol=2e-2), (loss2, ref2)

    # Third check: 'sum' reduction path.
    loss3 = label_smoothing_cross_entropy(logits, target, eps=0.1, reduction="sum")
    loss3 = jax.block_until_ready(loss3)
    lp = jax.nn.log_softmax(logits, axis=-1)
    ref3 = (-lp.sum()) * 0.1 / C + 0.9 * (
        -jnp.take_along_axis(lp, target[:, None], axis=-1).sum())
    assert jnp.allclose(loss3, ref3, atol=1e-4, rtol=1e-5), (loss3, ref3)

    print("KERNEL_OK")
</pallas_src>

<mosaic_0001>
module attributes {stable_mosaic.version = 11 : i64} {
  func.func @_lsce_kernel(%arg0: i32, %arg1: memref<8x32xf32, #tpu.memory_space<vmem>>, %arg2: memref<8x1xi32, #tpu.memory_space<vmem>>, %arg3: memref<1x128xf32, #tpu.memory_space<vmem>>) attributes {dimension_semantics = [#tpu.dimension_semantics<parallel>], iteration_bounds = array<i64: 1>, scalar_prefetch = 0 : i64, scratch_operands = 0 : i64, tpu.core_type = #tpu.core_type<tc>, window_params = [{transform_indices = @transform_0, window_bounds = array<i64: 8, 32>}, {transform_indices = @transform_1, window_bounds = array<i64: 8, 1>}, {transform_indices = @transform_2, window_bounds = array<i64: 1, 128>}]} {
    %c0 = arith.constant 0 : index
    %c0_0 = arith.constant 0 : index
    %0 = vector.load %arg1[%c0, %c0_0] : memref<8x32xf32, #tpu.memory_space<vmem>>, vector<8x32xf32>
    %cst = arith.constant dense<0xFF800000> : vector<8xf32>
    %1 = vector.multi_reduction <maximumf>, %0, %cst [1] : vector<8x32xf32> to vector<8xf32>
    %2 = vector.shape_cast %1 : vector<8xf32> to vector<8x1xf32>
    %3 = vector.broadcast %2 : vector<8x1xf32> to vector<8x32xf32>
    %4 = arith.subf %0, %3 : vector<8x32xf32>
    %5 = math.exp %4 : vector<8x32xf32>
    %cst_1 = arith.constant dense<0.000000e+00> : vector<8xf32>
    %6 = vector.multi_reduction <add>, %5, %cst_1 [1] : vector<8x32xf32> to vector<8xf32>
    %7 = vector.shape_cast %6 : vector<8xf32> to vector<8x1xf32>
    %8 = math.log %7 : vector<8x1xf32>
    %9 = arith.addf %2, %8 : vector<8x1xf32>
    %cst_2 = arith.constant dense<0.000000e+00> : vector<8xf32>
    %10 = vector.multi_reduction <add>, %0, %cst_2 [1] : vector<8x32xf32> to vector<8xf32>
    %11 = vector.shape_cast %10 : vector<8xf32> to vector<8x1xf32>
    %cst_3 = arith.constant 3.200000e+01 : f32
    %12 = vector.broadcast %cst_3 : f32 to vector<8x1xf32>
    %13 = arith.mulf %12, %9 : vector<8x1xf32>
    %14 = arith.subf %11, %13 : vector<8x1xf32>
    %15 = tpu.iota {dimensions = array<i32: 1>} : vector<8x32xi32>
    %c0_4 = arith.constant 0 : index
    %c0_5 = arith.constant 0 : index
    %16 = vector.load %arg2[%c0_4, %c0_5] : memref<8x1xi32, #tpu.memory_space<vmem>>, vector<8x1xi32>
    %17 = vector.broadcast %16 : vector<8x1xi32> to vector<8x32xi32>
    %18 = arith.cmpi eq, %15, %17 : vector<8x32xi32>
    %cst_6 = arith.constant 0.000000e+00 : f32
    %19 = vector.broadcast %cst_6 : f32 to vector<8x32xf32>
    %20 = arith.select %18, %0, %19 : vector<8x32xi1>, vector<8x32xf32>
    %cst_7 = arith.constant dense<0.000000e+00> : vector<8xf32>
    %21 = vector.multi_reduction <add>, %20, %cst_7 [1] : vector<8x32xf32> to vector<8xf32>
    %22 = vector.shape_cast %21 : vector<8xf32> to vector<8x1xf32>
    %23 = arith.subf %22, %9 : vector<8x1xf32>
    %24 = vector.shape_cast %14 : vector<8x1xf32> to vector<1x8x1xf32>
    %cst_8 = arith.constant dense<0.000000e+00> : vector<1xf32>
    %25 = vector.multi_reduction <add>, %24, %cst_8 [1, 2] : vector<1x8x1xf32> to vector<1xf32>
    %26 = vector.shape_cast %25 : vector<1xf32> to vector<1x1x1xf32>
    %27 = vector.extract %26[0, 0, 0] : f32 from vector<1x1x1xf32>
    %cst_9 = arith.constant 0.000000e+00 : f32
    %28 = arith.subf %cst_9, %27 : f32
    %29 = vector.shape_cast %23 : vector<8x1xf32> to vector<1x8x1xf32>
    %cst_10 = arith.constant dense<0.000000e+00> : vector<1xf32>
    %30 = vector.multi_reduction <add>, %29, %cst_10 [1, 2] : vector<1x8x1xf32> to vector<1xf32>
    %31 = vector.shape_cast %30 : vector<1xf32> to vector<1x1x1xf32>
    %32 = vector.extract %31[0, 0, 0] : f32 from vector<1x1x1xf32>
    %cst_11 = arith.constant 0.000000e+00 : f32
    %33 = arith.subf %cst_11, %32 : f32
    %34 = tpu.iota {dimensions = array<i32: 1>} : vector<1x128xi32>
    %c0_i32 = arith.constant 0 : i32
    %35 = vector.broadcast %c0_i32 : i32 to vector<1x128xi32>
    %36 = arith.cmpi eq, %34, %35 : vector<1x128xi32>
    %c1_i32 = arith.constant 1 : i32
    %37 = vector.broadcast %c1_i32 : i32 to vector<1x128xi32>
    %38 = arith.cmpi eq, %34, %37 : vector<1x128xi32>
    %cst_12 = arith.constant 0.000000e+00 : f32
    %39 = vector.broadcast %33 : f32 to vector<1x128xf32>
    %40 = vector.broadcast %cst_12 : f32 to vector<1x128xf32>
    %41 = arith.select %38, %39, %40 : vector<1x128xi1>, vector<1x128xf32>
    %42 = vector.broadcast %28 : f32 to vector<1x128xf32>
    %43 = arith.select %36, %42, %41 : vector<1x128xi1>, vector<1x128xf32>
    %c0_13 = arith.constant 0 : index
    %c0_14 = arith.constant 0 : index
    %44 = vector.load %arg3[%c0_13, %c0_14] : memref<1x128xf32, #tpu.memory_space<vmem>>, vector<1x128xf32>
    tpu.vector_store %arg3[%c0_13, %c0_14], %43 {strides = array<i32>} : memref<1x128xf32, #tpu.memory_space<vmem>>, vector<1x128xf32>,
    return
  }
  func.func @transform_0(%arg0: i32) -> (i32, i32) {
    %c0_i32 = arith.constant 0 : i32
    %c0_i32_0 = arith.constant 0 : i32
    return %arg0, %c0_i32 : i32, i32
  }
  func.func @transform_1(%arg0: i32) -> (i32, i32) {
    %c0_i32 = arith.constant 0 : i32
    %c0_i32_0 = arith.constant 0 : i32
    return %arg0, %c0_i32 : i32, i32
  }
  func.func @transform_2(%arg0: i32) -> (i32, i32) {
    %c0_i32 = arith.constant 0 : i32
    %c0_i32_0 = arith.constant 0 : i32
    return %arg0, %c0_i32 : i32, i32
  }
}

</mosaic_0001>

<bundles_post_ra>
// kernel: tpu_custom_call.1
= control target key start
LH: loop header
LB: loop body
LE: loop exit
PB: predicated region body
PF: predicated region fallthrough
CT: control target
= control target key end

     0   :  { %vm13_vm0 = vcmask 261120   ;;  %s156_s0 = inlined_call_operand.vmem [shape: f32[8,32], index: 0, kind: input, shape index: {}]   ;;  %s157_s1 = inlined_call_operand.vmem [shape: s32[8,1], index: 1, kind: input, shape index: {}]   ;;  %s158_s2 = inlined_call_operand.hbm [shape: f32[1,128], index: 2, kind: output, shape index: {}]  }
   0x1   :  { %v12_v0 = vld [vmem:[%s156_s0] sm:$0xff] }
   0x2   :  { %7 = vsyncpa [#allocation3], 0  ;;  %v14_v1 = vsel %vm13_vm0, %v12_v0, -inf  ;;  %v126_v2 = vmov 0   ;;  %v33_v3 = vld [vmem:[%s157_s1] sm:$0xff]  ;;  %v31_v9 = vlaneseq  ;;  %v26_v11 = vsel %vm13_vm0, %v12_v0, 0.0 }
   0x3   :  { %95 = vset.pattern.permute.xlu0 %v126_v2  ;;  %vm43_vm2 = vcmask 7168   ;;  %s127_s1 = smov [#allocation2]   ;;  %s80_s19 = sshll.u32 %s158_s2, 4  ;;  %s81_s19 = int_to_ptr.hbm [resolvable:$true] %s80_s19 }
   0x4   :  { %15 = vmax.xlane.f32.xlu0 %v14_v1  ;;  %v32_v10 = vand.u32 127, %v31_v9  ;;  %s78_s13 = sshll.u32 %s127_s1, 4  ;;  %s79_s13 = int_to_ptr.vmem [resolvable:$true] %s78_s13 }
   0x6   :  { %vm67_vm3 = vcmp.eq.s32.totalorder %v32_v10, 1  ;;  %vm66_vm4 = vcmp.eq.s32.totalorder %v32_v10, 0 }
  0x18   :  { %35 = vperm.xlu0 %95, %v33_v3  }
  0x77   :  { %v16_v4 = vpop.xlane.xlu0 %15 }
  0x78   :  { %v17_v5 = vsub.f32 %v12_v0, %v16_v4 }
  0x7a   :  { %v18_v6 = vmul.f32 1.442695, %v17_v5 }
  0x7c   :  { %96 = vpow2.f32 %v18_v6 }
  0x82   :  { %v97_v7 = vpop.eup %96 }
  0x83   :  { %v20_v8 = vsel %vm13_vm0, %v97_v7, 0.0 }
  0x84   :  { %21 = vadd.xlane.f32.xlu1 %v20_v8 }
  0x8a   :  { %v36_v12 = vpop.permute.xlu0 %35 }
  0x8b   :  { %vm37_vm1 = vcmp.eq.s32.totalorder %v32_v10, %v36_v12 }
  0x8c   :  { %v38_v13 = vsel %vm37_vm1, %v12_v0, 0.0  ;;  %27 = vadd.xlane.f32.xlu1 %v26_v11 }
  0x8d   :  { %v39_v14 = vsel %vm13_vm0, %v38_v13, 0.0 }
  0x8e   :  { %40 = vadd.xlane.f32.xlu2 %v39_v14 }
  0xf7   :  { %v22_v15 = vpop.xlane.xlu1 %21 }
  0xf8   :  { %98 = vlog2.f32 %v22_v15 }
  0xfe   :  { %v99_v16 = vpop.eup %98 }
  0xff   :  { %v24_v17 = vmul.f32 0.6931472, %v99_v16  ;;  %v28_v20 = vpop.xlane.xlu1 %27 }
 0x101   :  { %v25_v18 = vadd.f32 %v24_v17, %v16_v4  ;;  %v41_v19 = vpop.xlane.xlu2 %40 }
 0x103   :  { %v42_v21 = vsub.f32 %v41_v19, %v25_v18  ;;  %v29_v22 = vmul.f32 32.0, %v25_v18 }
 0x105   :  { %v30_v23 = vsub.f32 %v28_v20, %v29_v22  ;;  %v55_v24 = vsel %vm43_vm2, %v42_v21, 0.0 }
 0x106   :  { %56 = vadd.xlane.f32.xlu1 %v55_v24 }
 0x107   :  { %v44_v25 = vsel %vm43_vm2, %v30_v23, 0.0 }
 0x108   :  { %45 = vadd.xlane.f32.xlu2 %v44_v25 }
 0x179   :  { %v57_v26 = vpop.xlane.xlu1 %56 }
 0x17a   :  { %v58_v27 = vrot.slane %v57_v26, 4 }
 0x17b   :  { %v46_v28 = vpop.xlane.xlu2 %45 }
 0x17c   :  { %v59_v29 = vadd.f32 %v58_v27, %v57_v26  ;;  %v47_v30 = vrot.slane %v46_v28, 4 }
 0x17e   :  { %v60_v31 = vrot.slane %v59_v29, 2  ;;  %v48_v32 = vadd.f32 %v47_v30, %v46_v28 }
 0x180   :  { %v61_v33 = vadd.f32 %v60_v31, %v59_v29  ;;  %v49_v34 = vrot.slane %v48_v32, 2 }
 0x182   :  { %v50_v35 = vadd.f32 %v49_v34, %v48_v32  ;;  %v62_v36 = vrot.slane %v61_v33, 1 }
 0x184   :  { %v51_v37 = vrot.slane %v50_v35, 1  ;;  %v63_v39 = vadd.f32 %v62_v36, %v61_v33 }
 0x186   :  { %v52_v38 = vadd.f32 %v51_v37, %v50_v35 }
 0x188   :  { %89 = vpush %v52_v38 }
 0x189   :  { %91 = vpush %v63_v39 }
 0x1b9   :  { %s90_s0 = spop %89 }
 0x1ba   :  { %s54_s14 = ssub.f32 0.0, %s90_s0  ;;  %s92_s15 = spop %91 }
 0x1bb   :  { %s65_s16 = ssub.f32 0.0, %s92_s15 }
 0x1bc   :  { %v70_v40 = vstv %s54_s14 }
 0x1bd   :  { %v68_v41 = vstv %s65_s16 }
 0x1be   :  { %v69_v42 = vsel %vm67_vm3, %v68_v41, 0.0 }
 0x1bf   :  { %v71_v43 = vsel %vm66_vm4, %v70_v40, %v69_v42 }
 0x1c0   :  { %72 = vst [vmem:[#allocation2] sm:$0x1] %v71_v43 }
 0x1c1   :  { %83 = dma.vmem_to_hbm [thread:$0]  %s79_s13, 16, %s81_s19, [#allocation3]  }
 0x1c2   :  { %124 = dma.done.wait [#allocation3], 16  }
 0x1c3   :  { %125 = vsyncadd [#allocation3], 4294967280 }
 0x1c4   :  { %88 = vsyncpa [#allocation3], 1 }

</bundles_post_ra>
